<compile_context>
chip_gen: v6e
topology: v6e:2x2x1
jax: 0.10.0
libtpu: 0.0.40
codegen_flags: <defaults>
</compile_context>

<pallas_src>
import numpy as np
import jax
import jax.numpy as jnp
from jax import lax
from jax.experimental import pallas as pl
from jax.experimental.pallas import tpu as pltpu

EPS = 1e-5  # nn.BatchNorm1d default eps

# Conservative resident-VMEM budget: fits v7x (64 MiB physical) with headroom;
# trivially fits v5e/v6e (128 MiB).
_VMEM_BUDGET_BYTES = 44 << 20


def _round_up(x, m):
    return ((x + m - 1) // m) * m


# ---------------------------------------------------------------------------
# Single fused kernel: [Linear -> ReLU] * n_hidden  ->  Linear
# (BatchNorm already folded into the weights; Dropout is identity.)
# ---------------------------------------------------------------------------
def make_fused_mlp_kernel(num_relu_layers):
    def kernel(*refs):
        # refs = (x, w0, b0, w1, b1, ..., w_out, b_out, o)
        x_ref = refs[0]
        o_ref = refs[-1]
        h = x_ref[...]                       # f32 activations
        idx = 1
        for _ in range(num_relu_layers):
            w = refs[idx][...]               # bf16 weights
            b = refs[idx + 1][...]           # f32 bias
            idx += 2
            # bf16 x bf16 -> f32 accumulate on the MXU, bias+ReLU on the VPU.
            h = jnp.maximum(
                jnp.dot(h.astype(w.dtype), w,
                        preferred_element_type=jnp.float32) + b, 0.0)
        w = refs[idx][...]
        b = refs[idx + 1][...]
        o_ref[...] = jnp.dot(h.astype(w.dtype), w,
                             preferred_element_type=jnp.float32) + b
    return kernel


def _replicated_spec(shape, single_buffer):
    """BlockSpec for a grid-invariant operand (weights/biases)."""
    index_map = lambda i: (0,) * len(shape)
    if single_buffer:
        try:
            # Grid-invariant (constant index_map) -> one buffer is enough.
            return pl.BlockSpec(shape, index_map, pipeline_mode=pl.Buffered(1))
        except TypeError:
            pass  # this build has no pipeline_mode kwarg -> default buffering
    return pl.BlockSpec(shape, index_map)


def _vmem_footprint_bytes(tb, dims_p):
    """Rough resident-VMEM estimate for one grid step (single-buffer weights)."""
    w_bytes = sum(dims_p[i] * dims_p[i + 1] * 2 for i in range(len(dims_p) - 1))
    b_bytes = sum(8 * d * 4 for d in dims_p[1:])        # (1,h) pads to (8,h) f32
    act_bytes = 4 * tb * (2 * dims_p[0] + 2 * dims_p[-1] + 2 * max(dims_p))
    return w_bytes + b_bytes + act_bytes


def fused_mlp(x, weights_p, biases_p, dims_p, out_features, *, batch_block=1024):
    """x: (B, in_dim) f32.  weights_p[i]: (Kp_i, Hp_i) bf16, biases_p[i]: (1, Hp_i) f32.

    Weights/biases are already padded (to dims_p) and bf16-cast by
    prepare_inference_params. The batch is tiled over a 'parallel' grid axis;
    weights are replicated (and single-buffered) per block.
    """
    B, in_dim = x.shape
    assert in_dim <= dims_p[0]

    # --- batch tiling -------------------------------------------------------
    B_p = _round_up(B, 8)
    tb = min(batch_block, B_p)               # multiple of 8 by construction
    # v7x megacore: make sure the 'parallel' batch axis has >= 2 steps when
    # the batch is big enough to split (free on single-TC v5e/v6e).
    if B_p >= 16 and B_p // tb < 2:
        tb = _round_up(B_p // 2, 8)
    # Shrink the tile until the resident footprint fits the VMEM budget.
    while tb > 8 and _vmem_footprint_bytes(tb, dims_p) > _VMEM_BUDGET_BYTES:
        tb = max(8, _round_up(tb // 2, 8))
    B_p = _round_up(B_p, tb)

    # Padded batch rows produce nonzero activations (bias + ReLU) before being
    # sliced off — harmless because rows are independent; do NOT add any
    # reduction over the batch axis without masking.
    x_p = jnp.zeros((B_p, dims_p[0]), jnp.float32).at[:B, :in_dim].set(x)

    args = [x_p]
    for w, b in zip(weights_p, biases_p):
        args.append(w)
        args.append(b)

    footprint = _vmem_footprint_bytes(tb, dims_p)
    vmem_limit = int(min(48 << 20, max(2 * footprint, 16 << 20)))

    out_p = dims_p[-1]
    kernel = make_fused_mlp_kernel(len(weights_p) - 1)

    def call(single_buffer_weights):
        in_specs = [pl.BlockSpec((tb, dims_p[0]), lambda i: (i, 0))]
        for w, b in zip(weights_p, biases_p):
            in_specs.append(_replicated_spec(w.shape, single_buffer_weights))
            in_specs.append(_replicated_spec(b.shape, single_buffer_weights))
        return pl.pallas_call(
            kernel,
            out_shape=jax.ShapeDtypeStruct((B_p, out_p), jnp.float32),
            grid=(B_p // tb,),
            in_specs=in_specs,
            out_specs=pl.BlockSpec((tb, out_p), lambda i: (i, 0)),
            compiler_params=pltpu.CompilerParams(
                dimension_semantics=("parallel",),
                vmem_limit_bytes=vmem_limit),
        )(*args)

    try:
        y_p = call(True)
    except Exception:
        # Fallback if this build rejects pipeline_mode=pl.Buffered(1).
        y_p = call(False)
    return y_p[:B, :out_features]


# ---------------------------------------------------------------------------
# BatchNorm constant-folding (inference mode)
# ---------------------------------------------------------------------------
def fold_batchnorm(params):
    """Fold every inference-mode BatchNorm into the adjacent Linear.

    num_bn:          x_num*a + c  -> scale W0's numerical rows, add c@W0_num to b0.
    post-ReLU BN_i:  h*a + c      -> scale Linear_{i+1}'s rows, add c@W_{i+1} to b_{i+1}.
    """
    num_cat = params["num_cat"]

    def bn_affine(bn):
        a = bn["gamma"] * lax.rsqrt(bn["var"] + EPS)   # (1, N)
        c = bn["beta"] - bn["mean"] * a                # (1, N)
        return a, c

    weights, biases = [], []

    # Layer 0: fold the numerical-feature BN.
    l0 = params["mlp"][0]
    a, c = bn_affine(params["num_bn"])
    w0_emb = l0["w"][:num_cat, :]
    w0_num = l0["w"][num_cat:, :]
    weights.append(jnp.concatenate([w0_emb, w0_num * a.T], axis=0))
    biases.append(l0["b"] + c @ w0_num)

    # Each hidden layer's post-ReLU BN folds into the NEXT Linear.
    prev_bn = l0["bn"]
    for layer in params["mlp"][1:]:
        a, c = bn_affine(prev_bn)
        weights.append(layer["w"] * a.T)
        biases.append(layer["b"] + c @ layer["w"])
        prev_bn = layer["bn"]

    # Last hidden layer's BN folds into the output Linear.
    a, c = bn_affine(prev_bn)
    weights.append(params["w_out"] * a.T)
    biases.append(params["b_out"] + c @ params["w_out"])
    return weights, biases


def prepare_inference_params(params):
    """One-time (model-load) prep: fold BN, zero-pad, cast weights to bf16."""
    weights, biases = fold_batchnorm(params)
    in_dim = weights[0].shape[0]
    dims = [in_dim] + [w.shape[1] for w in weights]
    # Input-feature dim only needs sublane alignment (block == full array on
    # the lane axis); hidden/output dims stay lane-dense multiples of 128.
    dims_p = [_round_up(in_dim, 8)] + [_round_up(d, 128) for d in dims[1:]]

    weights_p, biases_p = [], []
    for li, (w, b) in enumerate(zip(weights, biases)):
        kp, hp = dims_p[li], dims_p[li + 1]
        w_p = (jnp.zeros((kp, hp), jnp.float32)
               .at[:w.shape[0], :w.shape[1]].set(w)
               .astype(jnp.bfloat16))                       # bf16 MXU operands
        b_p = jnp.zeros((1, hp), jnp.float32).at[:, :b.shape[1]].set(b)
        weights_p.append(w_p)
        biases_p.append(b_p)

    return {
        "embeddings": params["embeddings"],
        "weights": weights_p,
        "biases": biases_p,
        "dims_p": dims_p,
        "out_features": params["b_out"].shape[1],
    }


# ---------------------------------------------------------------------------
# Model: parameter init + forward
# ---------------------------------------------------------------------------
def init_params(key, embedding_size, num_numerical_cols, output_size, layers):
    params = {}
    keys = jax.random.split(key, 64)
    ki = iter(range(64))

    # Embedding tables (nn.Embedding default: N(0,1))
    params["embeddings"] = [
        jax.random.normal(keys[next(ki)], (ni, nf), jnp.float32)
        for ni, nf in embedding_size
    ]

    def bn_params(k, n):
        # Deterministic but non-trivial running stats.
        return {
            "gamma": (1.0 + 0.1 * jax.random.normal(k, (1, n))).astype(jnp.float32),
            "beta": (0.05 * jnp.arange(n, dtype=jnp.float32)).reshape(1, n),
            "mean": (0.1 * jax.random.normal(jax.random.fold_in(k, 1), (1, n))).astype(jnp.float32),
            "var": (1.0 + 0.2 * jax.random.uniform(jax.random.fold_in(k, 2), (1, n))).astype(jnp.float32),
        }

    params["num_bn"] = bn_params(keys[next(ki)], num_numerical_cols)

    num_cat = sum(nf for _, nf in embedding_size)
    in_size = num_cat + num_numerical_cols
    params["mlp"] = []
    for h in layers:
        bound = 1.0 / np.sqrt(in_size)
        w = jax.random.uniform(keys[next(ki)], (in_size, h), jnp.float32, -bound, bound)
        b = jax.random.uniform(keys[next(ki)], (1, h), jnp.float32, -bound, bound)
        params["mlp"].append({"w": w, "b": b, "bn": bn_params(keys[next(ki)], h)})
        in_size = h
    bound = 1.0 / np.sqrt(in_size)
    params["w_out"] = jax.random.uniform(keys[next(ki)], (in_size, output_size),
                                         jnp.float32, -bound, bound)
    params["b_out"] = jax.random.uniform(keys[next(ki)], (1, output_size),
                                         jnp.float32, -bound, bound)
    params["num_cat"] = num_cat
    return params


def forward(prep, x_categorical, x_numerical):
    """Inference forward using pre-folded / pre-padded params (prepare_inference_params)."""
    # Embedding lookups + concat (glue: gather in plain JAX).
    # TODO(synk): the gather could move in-kernel via scalar prefetch (pl.Element
    # row gather) to avoid materializing the concatenated activations in HBM.
    embs = [jnp.take(tbl, x_categorical[:, i], axis=0)
            for i, tbl in enumerate(prep["embeddings"])]
    x = jnp.concatenate(embs + [x_numerical], axis=1)
    # TODO(synk): Dropout (p=0.4) omitted — inference mode (identity).
    return fused_mlp(x, prep["weights"], prep["biases"],
                     prep["dims_p"], prep["out_features"])


def forward_ref(params, x_categorical, x_numerical):
    """Pure-JAX f32 reference (unfolded BN) for correctness check."""
    embs = [jnp.take(tbl, x_categorical[:, i], axis=0)
            for i, tbl in enumerate(params["embeddings"])]
    x = jnp.concatenate(embs, axis=1)
    nbn = params["num_bn"]
    xn = (x_numerical - nbn["mean"]) / jnp.sqrt(nbn["var"] + EPS) * nbn["gamma"] + nbn["beta"]
    x = jnp.concatenate([x, xn], axis=1)
    for layer in params["mlp"]:
        x = jnp.maximum(x @ layer["w"] + layer["b"], 0.0)
        bn = layer["bn"]
        x = (x - bn["mean"]) / jnp.sqrt(bn["var"] + EPS) * bn["gamma"] + bn["beta"]
    return x @ params["w_out"] + params["b_out"]


if __name__ == "__main__":
    # Small config consistent with the module's __init__ signature.
    embedding_size = [(10, 4), (7, 3), (5, 2)]   # (num_embeddings, emb_dim)
    num_numerical_cols = 4
    output_size = 3
    layers = [32, 16]
    batch = 64                                   # big enough for a 2-step parallel grid

    key = jax.random.PRNGKey(0)
    pkey, ckey, nkey = jax.random.split(key, 3)
    params = init_params(pkey, embedding_size, num_numerical_cols, output_size, layers)
    prep = prepare_inference_params(params)      # one-time fold/pad/bf16 cast

    # Inputs.
    maxes = jnp.array([ni for ni, _ in embedding_size], dtype=jnp.int32)
    x_categorical = (jax.random.randint(ckey, (batch, len(embedding_size)), 0, 1000)
                     % maxes).astype(jnp.int32)
    x_numerical = jax.random.normal(nkey, (batch, num_numerical_cols), jnp.float32)

    out = forward(prep, x_categorical, x_numerical)
    out = jax.block_until_ready(out)

    ref = forward_ref(params, x_categorical, x_numerical)
    # bf16 matmul operands -> bf16-level tolerance vs the f32 reference.
    np.testing.assert_allclose(np.asarray(out), np.asarray(ref), rtol=2e-2, atol=2e-2)
    assert out.shape == (batch, output_size)
    print("KERNEL_OK")
</pallas_src>

<mosaic_0001>
module attributes {stable_mosaic.version = 11 : i64} {
  func.func @kernel(%arg0: i32, %arg1: memref<32x16xf32, #tpu.memory_space<vmem>>, %arg2: memref<16x128xbf16, #tpu.memory_space<vmem>>, %arg3: memref<1x128xf32, #tpu.memory_space<vmem>>, %arg4: memref<128x128xbf16, #tpu.memory_space<vmem>>, %arg5: memref<1x128xf32, #tpu.memory_space<vmem>>, %arg6: memref<128x128xbf16, #tpu.memory_space<vmem>>, %arg7: memref<1x128xf32, #tpu.memory_space<vmem>>, %arg8: memref<32x128xf32, #tpu.memory_space<vmem>>) attributes {dimension_semantics = [#tpu.dimension_semantics<parallel>], iteration_bounds = array<i64: 2>, scalar_prefetch = 0 : i64, scratch_operands = 0 : i64, tpu.core_type = #tpu.core_type<tc>, window_params = [{transform_indices = @transform_0, window_bounds = array<i64: 32, 16>}, {pipeline_mode = #tpu.pipeline_mode<synchronous>, transform_indices = @transform_1, window_bounds = array<i64: 16, 128>}, {pipeline_mode = #tpu.pipeline_mode<synchronous>, transform_indices = @transform_2, window_bounds = array<i64: 1, 128>}, {pipeline_mode = #tpu.pipeline_mode<synchronous>, transform_indices = @transform_3, window_bounds = array<i64: 128, 128>}, {pipeline_mode = #tpu.pipeline_mode<synchronous>, transform_indices = @transform_4, window_bounds = array<i64: 1, 128>}, {pipeline_mode = #tpu.pipeline_mode<synchronous>, transform_indices = @transform_5, window_bounds = array<i64: 128, 128>}, {pipeline_mode = #tpu.pipeline_mode<synchronous>, transform_indices = @transform_6, window_bounds = array<i64: 1, 128>}, {transform_indices = @transform_7, window_bounds = array<i64: 32, 128>}]} {
    %c0 = arith.constant 0 : index
    %c0_0 = arith.constant 0 : index
    %0 = vector.load %arg1[%c0, %c0_0] : memref<32x16xf32, #tpu.memory_space<vmem>>, vector<32x16xf32>
    %c0_1 = arith.constant 0 : index
    %c0_2 = arith.constant 0 : index
    %1 = vector.load %arg2[%c0_1, %c0_2] : memref<16x128xbf16, #tpu.memory_space<vmem>>, vector<16x128xbf16>
    %c0_3 = arith.constant 0 : index
    %c0_4 = arith.constant 0 : index
    %2 = vector.load %arg3[%c0_3, %c0_4] : memref<1x128xf32, #tpu.memory_space<vmem>>, vector<1x128xf32>
    %3 = arith.truncf %0 : vector<32x16xf32> to vector<32x16xbf16>
    %cst = arith.constant dense<0.000000e+00> : vector<32x128xf32>
    %4 = tpu.matmul %3, %1, %cst {dimension_numbers = #tpu.dot_dimension_numbers<[1], [0], [0], [1], [0, 0, 1, 1], [], []>} : vector<32x16xbf16>, vector<16x128xbf16>, vector<32x128xf32> -> vector<32x128xf32>
    %5 = vector.broadcast %2 : vector<1x128xf32> to vector<32x128xf32>
    %6 = arith.addf %4, %5 : vector<32x128xf32>
    %cst_5 = arith.constant 0.000000e+00 : f32
    %7 = vector.broadcast %cst_5 : f32 to vector<32x128xf32>
    %8 = arith.maximumf %6, %7 : vector<32x128xf32>
    %c0_6 = arith.constant 0 : index
    %c0_7 = arith.constant 0 : index
    %9 = vector.load %arg4[%c0_6, %c0_7] : memref<128x128xbf16, #tpu.memory_space<vmem>>, vector<128x128xbf16>
    %c0_8 = arith.constant 0 : index
    %c0_9 = arith.constant 0 : index
    %10 = vector.load %arg5[%c0_8, %c0_9] : memref<1x128xf32, #tpu.memory_space<vmem>>, vector<1x128xf32>
    %11 = arith.truncf %8 : vector<32x128xf32> to vector<32x128xbf16>
    %cst_10 = arith.constant dense<0.000000e+00> : vector<32x128xf32>
    %12 = tpu.matmul %11, %9, %cst_10 {dimension_numbers = #tpu.dot_dimension_numbers<[1], [0], [0], [1], [0, 0, 1, 1], [], []>} : vector<32x128xbf16>, vector<128x128xbf16>, vector<32x128xf32> -> vector<32x128xf32>
    %13 = vector.broadcast %10 : vector<1x128xf32> to vector<32x128xf32>
    %14 = arith.addf %12, %13 : vector<32x128xf32>
    %cst_11 = arith.constant 0.000000e+00 : f32
    %15 = vector.broadcast %cst_11 : f32 to vector<32x128xf32>
    %16 = arith.maximumf %14, %15 : vector<32x128xf32>
    %c0_12 = arith.constant 0 : index
    %c0_13 = arith.constant 0 : index
    %17 = vector.load %arg6[%c0_12, %c0_13] : memref<128x128xbf16, #tpu.memory_space<vmem>>, vector<128x128xbf16>
    %c0_14 = arith.constant 0 : index
    %c0_15 = arith.constant 0 : index
    %18 = vector.load %arg7[%c0_14, %c0_15] : memref<1x128xf32, #tpu.memory_space<vmem>>, vector<1x128xf32>
    %19 = arith.truncf %16 : vector<32x128xf32> to vector<32x128xbf16>
    %cst_16 = arith.constant dense<0.000000e+00> : vector<32x128xf32>
    %20 = tpu.matmul %19, %17, %cst_16 {dimension_numbers = #tpu.dot_dimension_numbers<[1], [0], [0], [1], [0, 0, 1, 1], [], []>} : vector<32x128xbf16>, vector<128x128xbf16>, vector<32x128xf32> -> vector<32x128xf32>
    %21 = vector.broadcast %18 : vector<1x128xf32> to vector<32x128xf32>
    %22 = arith.addf %20, %21 : vector<32x128xf32>
    %c0_17 = arith.constant 0 : index
    %c0_18 = arith.constant 0 : index
    %23 = vector.load %arg8[%c0_17, %c0_18] : memref<32x128xf32, #tpu.memory_space<vmem>>, vector<32x128xf32>
    tpu.vector_store %arg8[%c0_17, %c0_18], %22 {strides = array<i32>} : memref<32x128xf32, #tpu.memory_space<vmem>>, vector<32x128xf32>,
    return
  }
  func.func @transform_0(%arg0: i32) -> (i32, i32) {
    %c0_i32 = arith.constant 0 : i32
    %c0_i32_0 = arith.constant 0 : i32
    return %arg0, %c0_i32 : i32, i32
  }
  func.func @transform_1(%arg0: i32) -> (i32, i32) {
    %c0_i32 = arith.constant 0 : i32
    %c0_i32_0 = arith.constant 0 : i32
    %c0_i32_1 = arith.constant 0 : i32
    return %c0_i32, %c0_i32_0 : i32, i32
  }
  func.func @transform_2(%arg0: i32) -> (i32, i32) {
    %c0_i32 = arith.constant 0 : i32
    %c0_i32_0 = arith.constant 0 : i32
    %c0_i32_1 = arith.constant 0 : i32
    return %c0_i32, %c0_i32_0 : i32, i32
  }
  func.func @transform_3(%arg0: i32) -> (i32, i32) {
    %c0_i32 = arith.constant 0 : i32
    %c0_i32_0 = arith.constant 0 : i32
    %c0_i32_1 = arith.constant 0 : i32
    return %c0_i32, %c0_i32_0 : i32, i32
  }
  func.func @transform_4(%arg0: i32) -> (i32, i32) {
    %c0_i32 = arith.constant 0 : i32
    %c0_i32_0 = arith.constant 0 : i32
    %c0_i32_1 = arith.constant 0 : i32
    return %c0_i32, %c0_i32_0 : i32, i32
  }
  func.func @transform_5(%arg0: i32) -> (i32, i32) {
    %c0_i32 = arith.constant 0 : i32
    %c0_i32_0 = arith.constant 0 : i32
    %c0_i32_1 = arith.constant 0 : i32
    return %c0_i32, %c0_i32_0 : i32, i32
  }
  func.func @transform_6(%arg0: i32) -> (i32, i32) {
    %c0_i32 = arith.constant 0 : i32
    %c0_i32_0 = arith.constant 0 : i32
    %c0_i32_1 = arith.constant 0 : i32
    return %c0_i32, %c0_i32_0 : i32, i32
  }
  func.func @transform_7(%arg0: i32) -> (i32, i32) {
    %c0_i32 = arith.constant 0 : i32
    %c0_i32_0 = arith.constant 0 : i32
    return %arg0, %c0_i32 : i32, i32
  }
}

module attributes {stable_mosaic.version = 11 : i64} {
  func.func @kernel(%arg0: i32, %arg1: memref<32x16xf32, #tpu.memory_space<vmem>>, %arg2: memref<16x128xbf16, #tpu.memory_space<vmem>>, %arg3: memref<1x128xf32, #tpu.memory_space<vmem>>, %arg4: memref<128x128xbf16, #tpu.memory_space<vmem>>, %arg5: memref<1x128xf32, #tpu.memory_space<vmem>>, %arg6: memref<128x128xbf16, #tpu.memory_space<vmem>>, %arg7: memref<1x128xf32, #tpu.memory_space<vmem>>, %arg8: memref<32x128xf32, #tpu.memory_space<vmem>>) attributes {dimension_semantics = [#tpu.dimension_semantics<parallel>], iteration_bounds = array<i64: 2>, scalar_prefetch = 0 : i64, scratch_operands = 0 : i64, tpu.core_type = #tpu.core_type<tc>, window_params = [{transform_indices = @transform_0, window_bounds = array<i64: 32, 16>}, {pipeline_mode = #tpu.pipeline_mode<synchronous>, transform_indices = @transform_1, window_bounds = array<i64: 16, 128>}, {pipeline_mode = #tpu.pipeline_mode<synchronous>, transform_indices = @transform_2, window_bounds = array<i64: 1, 128>}, {pipeline_mode = #tpu.pipeline_mode<synchronous>, transform_indices = @transform_3, window_bounds = array<i64: 128, 128>}, {pipeline_mode = #tpu.pipeline_mode<synchronous>, transform_indices = @transform_4, window_bounds = array<i64: 1, 128>}, {pipeline_mode = #tpu.pipeline_mode<synchronous>, transform_indices = @transform_5, window_bounds = array<i64: 128, 128>}, {pipeline_mode = #tpu.pipeline_mode<synchronous>, transform_indices = @transform_6, window_bounds = array<i64: 1, 128>}, {transform_indices = @transform_7, window_bounds = array<i64: 32, 128>}]} {
    %c0 = arith.constant 0 : index
    %c0_0 = arith.constant 0 : index
    %0 = vector.load %arg1[%c0, %c0_0] : memref<32x16xf32, #tpu.memory_space<vmem>>, vector<32x16xf32>
    %c0_1 = arith.constant 0 : index
    %c0_2 = arith.constant 0 : index
    %1 = vector.load %arg2[%c0_1, %c0_2] : memref<16x128xbf16, #tpu.memory_space<vmem>>, vector<16x128xbf16>
    %c0_3 = arith.constant 0 : index
    %c0_4 = arith.constant 0 : index
    %2 = vector.load %arg3[%c0_3, %c0_4] : memref<1x128xf32, #tpu.memory_space<vmem>>, vector<1x128xf32>
    %3 = arith.truncf %0 : vector<32x16xf32> to vector<32x16xbf16>
    %cst = arith.constant dense<0.000000e+00> : vector<32x128xf32>
    %4 = tpu.matmul %3, %1, %cst {dimension_numbers = #tpu.dot_dimension_numbers<[1], [0], [0], [1], [0, 0, 1, 1], [], []>} : vector<32x16xbf16>, vector<16x128xbf16>, vector<32x128xf32> -> vector<32x128xf32>
    %5 = vector.broadcast %2 : vector<1x128xf32> to vector<32x128xf32>
    %6 = arith.addf %4, %5 : vector<32x128xf32>
    %cst_5 = arith.constant 0.000000e+00 : f32
    %7 = vector.broadcast %cst_5 : f32 to vector<32x128xf32>
    %8 = arith.maximumf %6, %7 : vector<32x128xf32>
    %c0_6 = arith.constant 0 : index
    %c0_7 = arith.constant 0 : index
    %9 = vector.load %arg4[%c0_6, %c0_7] : memref<128x128xbf16, #tpu.memory_space<vmem>>, vector<128x128xbf16>
    %c0_8 = arith.constant 0 : index
    %c0_9 = arith.constant 0 : index
    %10 = vector.load %arg5[%c0_8, %c0_9] : memref<1x128xf32, #tpu.memory_space<vmem>>, vector<1x128xf32>
    %11 = arith.truncf %8 : vector<32x128xf32> to vector<32x128xbf16>
    %cst_10 = arith.constant dense<0.000000e+00> : vector<32x128xf32>
    %12 = tpu.matmul %11, %9, %cst_10 {dimension_numbers = #tpu.dot_dimension_numbers<[1], [0], [0], [1], [0, 0, 1, 1], [], []>} : vector<32x128xbf16>, vector<128x128xbf16>, vector<32x128xf32> -> vector<32x128xf32>
    %13 = vector.broadcast %10 : vector<1x128xf32> to vector<32x128xf32>
    %14 = arith.addf %12, %13 : vector<32x128xf32>
    %cst_11 = arith.constant 0.000000e+00 : f32
    %15 = vector.broadcast %cst_11 : f32 to vector<32x128xf32>
    %16 = arith.maximumf %14, %15 : vector<32x128xf32>
    %c0_12 = arith.constant 0 : index
    %c0_13 = arith.constant 0 : index
    %17 = vector.load %arg6[%c0_12, %c0_13] : memref<128x128xbf16, #tpu.memory_space<vmem>>, vector<128x128xbf16>
    %c0_14 = arith.constant 0 : index
    %c0_15 = arith.constant 0 : index
    %18 = vector.load %arg7[%c0_14, %c0_15] : memref<1x128xf32, #tpu.memory_space<vmem>>, vector<1x128xf32>
    %19 = arith.truncf %16 : vector<32x128xf32> to vector<32x128xbf16>
    %cst_16 = arith.constant dense<0.000000e+00> : vector<32x128xf32>
    %20 = tpu.matmul %19, %17, %cst_16 {dimension_numbers = #tpu.dot_dimension_numbers<[1], [0], [0], [1], [0, 0, 1, 1], [], []>} : vector<32x128xbf16>, vector<128x128xbf16>, vector<32x128xf32> -> vector<32x128xf32>
    %21 = vector.broadcast %18 : vector<1x128xf32> to vector<32x128xf32>
    %22 = arith.addf %20, %21 : vector<32x128xf32>
    %c0_17 = arith.constant 0 : index
    %c0_18 = arith.constant 0 : index
    %23 = vector.load %arg8[%c0_17, %c0_18] : memref<32x128xf32, #tpu.memory_space<vmem>>, vector<32x128xf32>
    tpu.vector_store %arg8[%c0_17, %c0_18], %22 {strides = array<i32>} : memref<32x128xf32, #tpu.memory_space<vmem>>, vector<32x128xf32>,
    return
  }
  func.func @transform_0(%arg0: i32) -> (i32, i32) {
    %c0_i32 = arith.constant 0 : i32
    %c0_i32_0 = arith.constant 0 : i32
    return %arg0, %c0_i32 : i32, i32
  }
  func.func @transform_1(%arg0: i32) -> (i32, i32) {
    %c0_i32 = arith.constant 0 : i32
    %c0_i32_0 = arith.constant 0 : i32
    %c0_i32_1 = arith.constant 0 : i32
    return %c0_i32, %c0_i32_0 : i32, i32
  }
  func.func @transform_2(%arg0: i32) -> (i32, i32) {
    %c0_i32 = arith.constant 0 : i32
    %c0_i32_0 = arith.constant 0 : i32
    %c0_i32_1 = arith.constant 0 : i32
    return %c0_i32, %c0_i32_0 : i32, i32
  }
  func.func @transform_3(%arg0: i32) -> (i32, i32) {
    %c0_i32 = arith.constant 0 : i32
    %c0_i32_0 = arith.constant 0 : i32
    %c0_i32_1 = arith.constant 0 : i32
    return %c0_i32, %c0_i32_0 : i32, i32
  }
  func.func @transform_4(%arg0: i32) -> (i32, i32) {
    %c0_i32 = arith.constant 0 : i32
    %c0_i32_0 = arith.constant 0 : i32
    %c0_i32_1 = arith.constant 0 : i32
    return %c0_i32, %c0_i32_0 : i32, i32
  }
  func.func @transform_5(%arg0: i32) -> (i32, i32) {
    %c0_i32 = arith.constant 0 : i32
    %c0_i32_0 = arith.constant 0 : i32
    %c0_i32_1 = arith.constant 0 : i32
    return %c0_i32, %c0_i32_0 : i32, i32
  }
  func.func @transform_6(%arg0: i32) -> (i32, i32) {
    %c0_i32 = arith.constant 0 : i32
    %c0_i32_0 = arith.constant 0 : i32
    %c0_i32_1 = arith.constant 0 : i32
    return %c0_i32, %c0_i32_0 : i32, i32
  }
  func.func @transform_7(%arg0: i32) -> (i32, i32) {
    %c0_i32 = arith.constant 0 : i32
    %c0_i32_0 = arith.constant 0 : i32
    return %arg0, %c0_i32 : i32, i32
  }
}

</mosaic_0001>

<bundles_post_ra>
// kernel: tpu_custom_call.1
= control target key start
LH: loop header
LB: loop body
LE: loop exit
PB: predicated region body
PF: predicated region fallthrough
CT: control target
= control target key end

     0   :  { %12 = vsyncpa [#allocation3], 0  ;;  %s1187_s0 = inlined_call_operand.vmem [shape: f32[64,16], index: 0, kind: input, shape index: {}]   ;;  %s1188_s1 = inlined_call_operand.vmem [shape: bf16[16,128], index: 1, kind: input, shape index: {}]   ;;  %s1189_s2 = inlined_call_operand.vmem [shape: f32[1,128], index: 2, kind: input, shape index: {}]   ;;  %s1190_s3 = inlined_call_operand.vmem [shape: bf16[128,128], index: 3, kind: input, shape index: {}]   ;;  %s1191_s4 = inlined_call_operand.vmem [shape: f32[1,128], index: 4, kind: input, shape index: {}]   ;;  %s1192_s5 = inlined_call_operand.hbm [shape: bf16[128,128], index: 5, kind: input, shape index: {}]   ;;  %s1193_s6 = inlined_call_operand.vmem [shape: f32[1,128], index: 6, kind: input, shape index: {}]   ;;  %s1194_s7 = inlined_call_operand.hbm [shape: f32[64,128], index: 7, kind: output, shape index: {}]  }
   0x1   :  { %13 = vsyncpa [#allocation4], 0 }
   0x2   :  { %15 = vsyncpa [#allocation4 + $0x1], 0  ;;  %s1032_s24 = smov 0   ;;  %s1034_s25 = smov 0  }
   0x3   :  { %s1036_s26 = smov 0   ;;  %s1038_s27 = smov 0  }
   0x4 LB: > { %s1053_s28 = sadd.s32 4294967295, %s984_s27   ;;  %s717_s29 = sadd.s32 4294967294, %s984_s27   ;;  %s984_s27 = sphi %s1038_s27, %s1202_s27   ;;  %s980_s26 = sphi %s1036_s26, %s1201_s26   ;;  %s976_s25 = sphi %s1034_s25, %s1200_s25   ;;  %s972_s24 = sphi %s1032_s24, %s1199_s24  }
   0x5   : > { %s1057_s30 = sadd.s32 1, %s984_s27   ;;  %s180_s8 = sadd.s32 1, %s980_s26 }
   0x6   : > { %s177_s9 = ssub.s32 %s984_s27, %s1057_s30  ;;  %p190_p0 = scmp.ne.s32.totalorder %s980_s26, %s976_s25 }
   0x7   : > { %p178_p1 = scmp.eq.s32.totalorder %s177_s9, 0  ;;  %p191_p2 = scmp.eq.s32.totalorder %s1053_s28, 1 }
   0x8   : > { %p196_p3 = scmp.ne.s32.totalorder %s976_s25, %s972_s24  ;;  %p197_p4 = scmp.eq.s32.totalorder %s717_s29, 1 }
   0x9   : > { %s1068_s10 = scalar_select %p178_p1, %s980_s26, %s180_s8  }
   0xa   : > { %p1070_p5 = por %p191_p2, %p190_p0  ;;  %p1074_p6 = por %p197_p4, %p196_p3 }
   0xb   : > { %p718_p7 = scmp.ge.s32.totalorder %s984_s27, 1  ;;  %p204_p8 = scmp.lt.s32.totalorder %s984_s27, 3 }
   0xc   : > { %s1196_s12 = scalar_select %p1074_p6, 1, 0 }
   0xd   : > { %p837_p9 = scmp.eq.s32.totalorder %s1053_s28, 0  ;;  %p1081_p10 = pnand %p718_p7, %p204_p8 }
   0xe   : > { %s986_s14 = smov [#allocation2]  }
   0xf   : > { %s228_s15 = sshll.u32 %s986_s14, 4  ;;  %p829_p11 = pneg %p1081_p10  ;;  %s229_s15 = int_to_ptr.vmem [resolvable:$true] %s228_s15 }
  0x10   : > { %s905_s16 = scalar_lea.vmem %s229_s15, 1024  ;;  %p913_p3 = scmp.lt.s32.totalorder %s229_s15, %s229_s15 }
  0x11   : > { %p830_p12 = pnand %p837_p9, %p829_p11  ;;  %p906_p0 = scmp.ne.s32.totalorder %s229_s15, %s905_s16 }
  0x12   : > { %p914_p4 = scmp.lt.s32.totalorder %s905_s16, %s905_s16 }
  0x13   : > { %p896_p13 = pneg %p830_p12 }
  0x14   : > { %p915_p6 = por %p914_p4, %p913_p3 }
  0x15   : > { %p908_p1 = pnand %p906_p0, %p896_p13 }
  0x17   : > { %p909_p2 = pneg %p908_p1 }
  0x19   : > { %p916_p7 = pnand %p915_p6, %p909_p2 }
  0x1b   : > { %919 = shalt.err (!%p916_p7)
}
  0x1c   : > { %s987_s17 = smov 64   ;;  %s988_s18 = smov 4  }
  0x1d   : > { %832 = dma.hbm_to_vmem [thread:$0]  (!%p830_p12), %s1192_s5, 1024, %s229_s15, [#allocation3], %s987_s17, %s987_s17, %s988_s18  }
  0x1e   : > { %256 = sbr.rel (%p1081_p10) target bundleno = 673 (0x2a1), region = 48 }
  0x23   : > { %963 = dma.done.wait (%p837_p9), [#allocation3], 1024  }
  0x24   : > { %965 = vsyncadd (%p837_p9), [#allocation3], 4294966272  ;;  %s724_s21 = sshll.u32 %s1053_s28, 2  ;;  %v877_v0 = vld [vmem:[%s1188_s1] sm:$0xff]   ;;  %vm317_vm0 = vcmask 130048   ;;  %v878_v7 = vld [vmem:[%s1190_s3 + $0x38] sm:$0xff]  }
  0x25   : > { %p289_p8 = scmp.lt.s32.totalorder %s724_s21, 7  ;;  %777 = vmatprep.subr.bf16.mxu0 %v877_v0  ;;  %v879_v8 = vld [vmem:[%s1190_s3 + $0x30] sm:$0xff]   ;;  %783 = vmatprep.subr.bf16.mxu1 %v878_v7  ;;  %v880_v9 = vld [vmem:[%s1190_s3 + $0x28] sm:$0xff]   ;;  %v881_v10 = vld [vmem:[%s1190_s3 + $0x20] sm:$0xff]   ;;  %s285_s20 = sand.u32 1, %s976_s25  }
  0x26   : > { %778 = vmatpush3.bf16.msra.mxu0 %v877_v0  ;;  %784 = vmatpush3.bf16.msra.mxu1 %v878_v7  ;;  %v882_v11 = vld [vmem:[%s1190_s3 + $0x18] sm:$0xff]   ;;  %v883_v12 = vld [vmem:[%s1190_s3 + $0x10] sm:$0xff]   ;;  %v884_v13 = vld [vmem:[%s1190_s3 + $0x8] sm:$0xff]   ;;  %s753_s9 = sshll.u32 %s1053_s28, 9  ;;  %s1147_s16 = scalar_lea.sflag [#allocation4], %s285_s20 }
  0x27   : > { %s1204_s21 = smov (!%p289_p8, %s724_s21), 7  ;;  %785 = vmatprep.subr.bf16.mxu1 %v879_v8  ;;  %v885_v14 = vld [vmem:[%s1190_s3] sm:$0xff]   ;;  %v886_v15 = vld [vmem:[#allocation2 + $0x38] sm:$0xff]   ;;  %v887_v16 = vld [vmem:[#allocation2 + $0x30] sm:$0xff]   ;;  %s1145_s15 = scalar_lea.hbm %s1194_s7, %s753_s9 }
  0x28   : > { %s725_s22 = sshll.u32 %s1204_s21, 3  ;;  %803 = vmatprep.subr.bf16.mxu0 %v886_v15  ;;  %v888_v17 = vld [vmem:[#allocation2 + $0x28] sm:$0xff]   ;;  %v889_v18 = vld [vmem:[#allocation2 + $0x20] sm:$0xff]   ;;  %v890_v19 = vld [vmem:[#allocation2 + $0x18] sm:$0xff]   ;;  %s723_s21 = sshll.u32 %s285_s20, 5 }
  0x29   : > { %s292_s8 = scalar_lea.vmem %s1187_s0, %s725_s22  ;;  %v726_v22 = vld [vmem:[%s1189_s2] ss:$0 sm:$0xff]  ;;  %v891_v35 = vld [vmem:[#allocation2 + $0x10] sm:$0xff]   ;;  %v892_v36 = vld [vmem:[#allocation2 + $0x8] sm:$0xff]   ;;  %s287_s29 = scalar_lea.vmem [#allocation5], %s723_s21 }
  0x2a   : > { %v296_v1 = vld [vmem:[%s292_s8] sm:$0xff]  ;;  %v297_v2 = vld [vmem:[%s292_s8 + $0x8] sm:$0xff]  ;;  %v298_v3 = vld [vmem:[%s292_s8 + $0x10] sm:$0xff]  ;;  %786 = vmatpush3.bf16.msra.mxu1 %v879_v8  ;;  %s989_s17 = smov [#allocation5]  }
  0x2b   : > { %v303_v4 = vpack.c.bf16 %v297_v2, %v296_v1  ;;  %v299_v5 = vld [vmem:[%s292_s8 + $0x18] sm:$0xff]  ;;  %787 = vmatprep.subr.bf16.mxu1 %v880_v9  ;;  %v893_v37 = vld [vmem:[#allocation2] sm:$0xff]   ;;  %s643_s8 = sshll.u32 %s287_s29, 4  ;;  %s924_s18 = sshll.u32 %s989_s17, 4  ;;  %s1140_s8 = int_to_ptr.vmem [resolvable:$true] %s643_s8  ;;  %s925_s18 = int_to_ptr.vmem [resolvable:$false] %s924_s18 }
  0x2c   : > { %v304_v6 = vpack.c.bf16 %v299_v5, %v298_v3  ;;  %v730_v40 = vld [vmem:[%s1191_s4] ss:$0 sm:$0xff]  ;;  %s920_s28 = scalar_lea.vmem %s1140_s8, 512  ;;  %s926_s19 = scalar_lea.vmem %s925_s18, 1024 }
  0x2d   : > { %779 = vmatprep.mubr.msk.bf16.mxu0 %vm317_vm0, %v303_v4  ;;  %v739_v53 = vld [vmem:[%s1193_s6] ss:$0 sm:$0xff]  ;;  %p921_p6 = scmp.ne.s32.totalorder %s1140_s8, %s920_s28  ;;  %p927_p11 = scmp.lt.s32.totalorder %s1140_s8, %s925_s18 }
  0x2e   : > { %780 = vmatmul.mubr.msk.bf16.vlgmr.msra.gmra.mxu0 %vm317_vm0, %v304_v6  ;;  %788 = vmatpush3.bf16.msra.mxu1 %v880_v9  ;;  %p928_p12 = scmp.lt.s32.totalorder %s926_s19, %s920_s28 }
  0x2f   : > { %789 = vmatprep.subr.bf16.mxu1 %v881_v10  ;;  %804 = vmatpush3.bf16.msra.mxu0 %v886_v15  ;;  %p922_p9 = pnand %p921_p6, %p1070_p5 }
  0x30   : > { %805 = vmatprep.subr.bf16.mxu0 %v887_v16  ;;  %p929_p13 = por %p928_p12, %p927_p11 }
  0x31   : > { %p923_p10 = pneg %p922_p9 }
  0x32   : > { %790 = vmatpush3.bf16.msra.mxu1 %v881_v10 }
  0x33   : > { %791 = vmatprep.subr.bf16.mxu1 %v882_v11  ;;  %806 = vmatpush3.bf16.msra.mxu0 %v887_v16  ;;  %p930_p0 = pnand %p929_p13, %p923_p10 }
  0x34   : > { %807 = vmatprep.subr.bf16.mxu0 %v888_v17 }
  0x36   : > { %792 = vmatpush3.bf16.msra.mxu1 %v882_v11 }
  0x37   : > { %793 = vmatprep.subr.bf16.mxu1 %v883_v12  ;;  %808 = vmatpush3.bf16.msra.mxu0 %v888_v17 }
  0x38   : > { %809 = vmatprep.subr.bf16.mxu0 %v889_v18 }
  0x3a   : > { %794 = vmatpush3.bf16.msra.mxu1 %v883_v12 }
  0x3b   : > { %795 = vmatprep.subr.bf16.mxu1 %v884_v13  ;;  %810 = vmatpush3.bf16.msra.mxu0 %v889_v18 }
  0x3c   : > { %811 = vmatprep.subr.bf16.mxu0 %v890_v19 }
  0x3e   : > { %796 = vmatpush3.bf16.msra.mxu1 %v884_v13 }
  0x3f   : > { %797 = vmatprep.subr.bf16.mxu1 %v885_v14  ;;  %812 = vmatpush3.bf16.msra.mxu0 %v890_v19 }
  0x40   : > { %813 = vmatprep.subr.bf16.mxu0 %v891_v35 }
  0x42   : > { %798 = vmatpush3.bf16.msra.mxu1 %v885_v14 }
  0x43   : > { %814 = vmatpush3.bf16.msra.mxu0 %v891_v35 }
  0x44   : > { %815 = vmatprep.subr.bf16.mxu0 %v892_v36 }
  0x47   : > { %816 = vmatpush3.bf16.msra.mxu0 %v892_v36 }
  0x48   : > { %817 = vmatprep.subr.bf16.mxu0 %v893_v37 }
  0x4b   : > { %818 = vmatpush3.bf16.msra.mxu0 %v893_v37 }
  0xee   : > { %v781_v20 = vpop.f32.mrf.mxu0 }
  0xef   : > { %v367_v26 = vadd.f32 %v781_v20, %v726_v22 }
  0xf0   : > { %v358_v21 = vpop.f32.mrf.mxu0 }
  0xf1   : > { %v359_v24 = vadd.f32 %v726_v22, %v358_v21  ;;  %v375_v32 = vmax.f32 %v367_v26, 0.0 }
  0xf2   : > { %v782_v23 = vpop.f32.mrf.mxu0 }
  0xf3   : > { %v370_v25 = vadd.f32 %v782_v23, %v726_v22  ;;  %v373_v30 = vmax.f32 %v359_v24, 0.0 }
  0xf4   : > { %v361_v27 = vpop.f32.mrf.mxu0 }
  0xf5   : > { %v362_v28 = vadd.f32 %v726_v22, %v361_v27  ;;  %v376_v29 = vmax.f32 %v370_v25, 0.0 }
  0xf7   : > { %v374_v31 = vmax.f32 %v362_v28, 0.0  ;;  %v395_v34 = vpack.c.bf16 %v376_v29, %v375_v32 }
  0xf9   : > { %v394_v33 = vpack.c.bf16 %v374_v31, %v373_v30 }
  0xfb   : > { %799 = vmatprep.mubr.bf16.mxu1 %v394_v33 }
  0xfc   : > { %800 = vmatmul.mubr.bf16.vlgmr.msra.gmra.mxu1 %v395_v34 }
 0x1bc   : > { %v801_v38 = vpop.f32.mrf.mxu1 }
 0x1bd   : > { %v493_v44 = vadd.f32 %v801_v38, %v730_v40 }
 0x1be   : > { %v484_v39 = vpop.f32.mrf.mxu1 }
 0x1bf   : > { %v485_v42 = vadd.f32 %v730_v40, %v484_v39  ;;  %v501_v50 = vmax.f32 %v493_v44, 0.0 }
 0x1c0   : > { %v802_v41 = vpop.f32.mrf.mxu1 }
 0x1c1   : > { %v496_v43 = vadd.f32 %v802_v41, %v730_v40  ;;  %v499_v48 = vmax.f32 %v485_v42, 0.0 }
 0x1c2   : > { %v487_v45 = vpop.f32.mrf.mxu1 }
 0x1c3   : > { %v488_v46 = vadd.f32 %v730_v40, %v487_v45  ;;  %v502_v47 = vmax.f32 %v496_v43, 0.0 }
 0x1c5   : > { %v500_v49 = vmax.f32 %v488_v46, 0.0  ;;  %v521_v52 = vpack.c.bf16 %v502_v47, %v501_v50 }
 0x1c7   : > { %v520_v51 = vpack.c.bf16 %v500_v49, %v499_v48 }
 0x1c9   : > { %819 = vmatprep.mubr.bf16.mxu0 %v520_v51 }
 0x1ca   : > { %820 = vmatmul.mubr.bf16.vlgmr.msra.gmra.mxu0 %v521_v52 }
 0x28a   : > { %v821_v54 = vpop.f32.mrf.mxu0 }
 0x28b   : > { %v619_v55 = vadd.f32 %v821_v54, %v739_v53 }
 0x28c   : > { %v610_v56 = vpop.f32.mrf.mxu0 }
 0x28d   : > { %627 = vst [vmem:[%s287_s29 + $0x10] sm:$0xff] %v619_v55  ;;  %v611_v57 = vadd.f32 %v739_v53, %v610_v56 }
 0x28e   : > { %v822_v58 = vpop.f32.mrf.mxu0 }
 0x28f   : > { %625 = vst [vmem:[%s287_s29] sm:$0xff] %v611_v57  ;;  %v622_v59 = vadd.f32 %v822_v58, %v739_v53 }
 0x290   : > { %v613_v60 = vpop.f32.mrf.mxu0 }
 0x291   : > { %628 = vst [vmem:[%s287_s29 + $0x18] sm:$0xff] %v622_v59  ;;  %v614_v61 = vadd.f32 %v739_v53, %v613_v60 }
 0x293   : > { %626 = vst [vmem:[%s287_s29 + $0x8] sm:$0xff] %v614_v61 }
 0x294   : > { %933 = shalt.err (!%p930_p0)
}
 0x295   : > { %s934_s20 = scalar_lea.hbm %s1145_s15, 512  ;;  %s938_s23 = scalar_lea.hbm %s1194_s7, 1024 }
 0x296   : > { %p935_p1 = scmp.ne.s32.totalorder %s1145_s15, %s934_s20  ;;  %p939_p4 = scmp.lt.s32.totalorder %s1145_s15, %s1194_s7 }
 0x297   : > { %p940_p7 = scmp.lt.s32.totalorder %s938_s23, %s934_s20 }
 0x298   : > { %p936_p2 = pnand %p935_p1, %p1070_p5 }
 0x299   : > { %p941_p8 = por %p940_p7, %p939_p4 }
 0x29a   : > { %p937_p3 = pneg %p936_p2 }
 0x29c   : > { %p942_p6 = pnand %p941_p8, %p937_p3 }
 0x29e   : > { %945 = shalt.err (!%p942_p6)
}
 0x29f   : > { %s990_s14 = smov 128   ;;  %s991_s13 = smov 8  }
 0x2a0   : > { %827 = dma.vmem_to_hbm [thread:$0]  (%p1070_p5), %s1140_s8, 512, %s1145_s15, %s1147_s16, %s990_s14, %s990_s14, %s991_s13  }
 0x2a1 PF: > { %p839_p9 = scmp.ge.s32.totalorder %s984_s27, 2  ;;  %s658_s28 = sand.u32 1, %s972_s24  }
 0x2a2   : > { %p1198_p10 = scmp.ne.s32.totalorder %s1196_s12, 0  ;;  %s659_s17 = scalar_lea.sflag [#allocation4], %s658_s28 }
 0x2a4   : > { %p834_p11 = pnand %p839_p9, %p1198_p10 }
 0x2a6   : > { %p835_p12 = pneg %p834_p11 }
 0x2a8   : > { %967 = dma.done.wait (%p835_p12), %s659_s17, 512  }
 0x2a9   : > { %969 = vsyncadd (%p835_p12), %s659_s17, 4294966784  ;;  %p18_p13 = scmp.ge.s32.totalorder %s1057_s30, 4   ;;  %s1199_s24 = smov %s976_s25 }
 0x2aa   : > { %s1200_s25 = smov %s980_s26  ;;  %s1201_s26 = smov %s1068_s10 }
 0x2ab   : > { %s1202_s27 = smov %s1057_s30  ;;  %20 = sbr.rel (!%p18_p13) target bundleno = 4 (0x4), region = 88 }
 0x2b0   :  { %664 = vsyncpa [#allocation3], 1 }
 0x2b1   :  { %666 = vsyncpa [#allocation3 + $0x1], 1 }
 0x2b2   :  { %667 = vsyncpa [#allocation4], 1 }
 0x2b3   :  { %669 = vsyncpa [#allocation4 + $0x1], 1 }

// kernel: tpu_custom_call.1
= control target key start
LH: loop header
LB: loop body
LE: loop exit
PB: predicated region body
PF: predicated region fallthrough
CT: control target
= control target key end

     0   :  { %12 = vsyncpa [#allocation3], 0  ;;  %s1187_s0 = inlined_call_operand.vmem [shape: f32[64,16], index: 0, kind: input, shape index: {}]   ;;  %s1188_s1 = inlined_call_operand.vmem [shape: bf16[16,128], index: 1, kind: input, shape index: {}]   ;;  %s1189_s2 = inlined_call_operand.vmem [shape: f32[1,128], index: 2, kind: input, shape index: {}]   ;;  %s1190_s3 = inlined_call_operand.vmem [shape: bf16[128,128], index: 3, kind: input, shape index: {}]   ;;  %s1191_s4 = inlined_call_operand.vmem [shape: f32[1,128], index: 4, kind: input, shape index: {}]   ;;  %s1192_s5 = inlined_call_operand.hbm [shape: bf16[128,128], index: 5, kind: input, shape index: {}]   ;;  %s1193_s6 = inlined_call_operand.vmem [shape: f32[1,128], index: 6, kind: input, shape index: {}]   ;;  %s1194_s7 = inlined_call_operand.hbm [shape: f32[64,128], index: 7, kind: output, shape index: {}]  }
   0x1   :  { %13 = vsyncpa [#allocation4], 0 }
   0x2   :  { %15 = vsyncpa [#allocation4 + $0x1], 0  ;;  %s1032_s24 = smov 0   ;;  %s1034_s25 = smov 0  }
   0x3   :  { %s1036_s26 = smov 0   ;;  %s1038_s27 = smov 0  }
   0x4 LB: > { %s1053_s28 = sadd.s32 4294967295, %s984_s27   ;;  %s717_s29 = sadd.s32 4294967294, %s984_s27   ;;  %s984_s27 = sphi %s1038_s27, %s1202_s27   ;;  %s980_s26 = sphi %s1036_s26, %s1201_s26   ;;  %s976_s25 = sphi %s1034_s25, %s1200_s25   ;;  %s972_s24 = sphi %s1032_s24, %s1199_s24  }
   0x5   : > { %s1057_s30 = sadd.s32 1, %s984_s27   ;;  %s180_s8 = sadd.s32 1, %s980_s26 }
   0x6   : > { %s177_s9 = ssub.s32 %s984_s27, %s1057_s30  ;;  %p190_p0 = scmp.ne.s32.totalorder %s980_s26, %s976_s25 }
   0x7   : > { %p178_p1 = scmp.eq.s32.totalorder %s177_s9, 0  ;;  %p191_p2 = scmp.eq.s32.totalorder %s1053_s28, 1 }
   0x8   : > { %p196_p3 = scmp.ne.s32.totalorder %s976_s25, %s972_s24  ;;  %p197_p4 = scmp.eq.s32.totalorder %s717_s29, 1 }
   0x9   : > { %s1068_s10 = scalar_select %p178_p1, %s980_s26, %s180_s8  }
   0xa   : > { %p1070_p5 = por %p191_p2, %p190_p0  ;;  %p1074_p6 = por %p197_p4, %p196_p3 }
   0xb   : > { %p718_p7 = scmp.ge.s32.totalorder %s984_s27, 1  ;;  %p204_p8 = scmp.lt.s32.totalorder %s984_s27, 3 }
   0xc   : > { %s1196_s12 = scalar_select %p1074_p6, 1, 0 }
   0xd   : > { %p837_p9 = scmp.eq.s32.totalorder %s1053_s28, 0  ;;  %p1081_p10 = pnand %p718_p7, %p204_p8 }
   0xe   : > { %s986_s14 = smov [#allocation2]  }
   0xf   : > { %s228_s15 = sshll.u32 %s986_s14, 4  ;;  %p829_p11 = pneg %p1081_p10  ;;  %s229_s15 = int_to_ptr.vmem [resolvable:$true] %s228_s15 }
  0x10   : > { %s905_s16 = scalar_lea.vmem %s229_s15, 1024  ;;  %p913_p3 = scmp.lt.s32.totalorder %s229_s15, %s229_s15 }
  0x11   : > { %p830_p12 = pnand %p837_p9, %p829_p11  ;;  %p906_p0 = scmp.ne.s32.totalorder %s229_s15, %s905_s16 }
  0x12   : > { %p914_p4 = scmp.lt.s32.totalorder %s905_s16, %s905_s16 }
  0x13   : > { %p896_p13 = pneg %p830_p12 }
  0x14   : > { %p915_p6 = por %p914_p4, %p913_p3 }
  0x15   : > { %p908_p1 = pnand %p906_p0, %p896_p13 }
  0x17   : > { %p909_p2 = pneg %p908_p1 }
  0x19   : > { %p916_p7 = pnand %p915_p6, %p909_p2 }
  0x1b   : > { %919 = shalt.err (!%p916_p7)
}
  0x1c   : > { %s987_s17 = smov 64   ;;  %s988_s18 = smov 4  }
  0x1d   : > { %832 = dma.hbm_to_vmem [thread:$0]  (!%p830_p12), %s1192_s5, 1024, %s229_s15, [#allocation3], %s987_s17, %s987_s17, %s988_s18  }
  0x1e   : > { %256 = sbr.rel (%p1081_p10) target bundleno = 673 (0x2a1), region = 48 }
  0x23   : > { %963 = dma.done.wait (%p837_p9), [#allocation3], 1024  }
  0x24   : > { %965 = vsyncadd (%p837_p9), [#allocation3], 4294966272  ;;  %s724_s21 = sshll.u32 %s1053_s28, 2  ;;  %v877_v0 = vld [vmem:[%s1188_s1] sm:$0xff]   ;;  %vm317_vm0 = vcmask 130048   ;;  %v878_v7 = vld [vmem:[%s1190_s3 + $0x38] sm:$0xff]  }
  0x25   : > { %p289_p8 = scmp.lt.s32.totalorder %s724_s21, 7  ;;  %777 = vmatprep.subr.bf16.mxu0 %v877_v0  ;;  %v879_v8 = vld [vmem:[%s1190_s3 + $0x30] sm:$0xff]   ;;  %783 = vmatprep.subr.bf16.mxu1 %v878_v7  ;;  %v880_v9 = vld [vmem:[%s1190_s3 + $0x28] sm:$0xff]   ;;  %v881_v10 = vld [vmem:[%s1190_s3 + $0x20] sm:$0xff]   ;;  %s285_s20 = sand.u32 1, %s976_s25  }
  0x26   : > { %778 = vmatpush3.bf16.msra.mxu0 %v877_v0  ;;  %784 = vmatpush3.bf16.msra.mxu1 %v878_v7  ;;  %v882_v11 = vld [vmem:[%s1190_s3 + $0x18] sm:$0xff]   ;;  %v883_v12 = vld [vmem:[%s1190_s3 + $0x10] sm:$0xff]   ;;  %v884_v13 = vld [vmem:[%s1190_s3 + $0x8] sm:$0xff]   ;;  %s753_s9 = sshll.u32 %s1053_s28, 9  ;;  %s1147_s16 = scalar_lea.sflag [#allocation4], %s285_s20 }
  0x27   : > { %s1204_s21 = smov (!%p289_p8, %s724_s21), 7  ;;  %785 = vmatprep.subr.bf16.mxu1 %v879_v8  ;;  %v885_v14 = vld [vmem:[%s1190_s3] sm:$0xff]   ;;  %v886_v15 = vld [vmem:[#allocation2 + $0x38] sm:$0xff]   ;;  %v887_v16 = vld [vmem:[#allocation2 + $0x30] sm:$0xff]   ;;  %s1145_s15 = scalar_lea.hbm %s1194_s7, %s753_s9 }
  0x28   : > { %s725_s22 = sshll.u32 %s1204_s21, 3  ;;  %803 = vmatprep.subr.bf16.mxu0 %v886_v15  ;;  %v888_v17 = vld [vmem:[#allocation2 + $0x28] sm:$0xff]   ;;  %v889_v18 = vld [vmem:[#allocation2 + $0x20] sm:$0xff]   ;;  %v890_v19 = vld [vmem:[#allocation2 + $0x18] sm:$0xff]   ;;  %s723_s21 = sshll.u32 %s285_s20, 5 }
  0x29   : > { %s292_s8 = scalar_lea.vmem %s1187_s0, %s725_s22  ;;  %v726_v22 = vld [vmem:[%s1189_s2] ss:$0 sm:$0xff]  ;;  %v891_v35 = vld [vmem:[#allocation2 + $0x10] sm:$0xff]   ;;  %v892_v36 = vld [vmem:[#allocation2 + $0x8] sm:$0xff]   ;;  %s287_s29 = scalar_lea.vmem [#allocation5], %s723_s21 }
  0x2a   : > { %v296_v1 = vld [vmem:[%s292_s8] sm:$0xff]  ;;  %v297_v2 = vld [vmem:[%s292_s8 + $0x8] sm:$0xff]  ;;  %v298_v3 = vld [vmem:[%s292_s8 + $0x10] sm:$0xff]  ;;  %786 = vmatpush3.bf16.msra.mxu1 %v879_v8  ;;  %s989_s17 = smov [#allocation5]  }
  0x2b   : > { %v303_v4 = vpack.c.bf16 %v297_v2, %v296_v1  ;;  %v299_v5 = vld [vmem:[%s292_s8 + $0x18] sm:$0xff]  ;;  %787 = vmatprep.subr.bf16.mxu1 %v880_v9  ;;  %v893_v37 = vld [vmem:[#allocation2] sm:$0xff]   ;;  %s643_s8 = sshll.u32 %s287_s29, 4  ;;  %s924_s18 = sshll.u32 %s989_s17, 4  ;;  %s1140_s8 = int_to_ptr.vmem [resolvable:$true] %s643_s8  ;;  %s925_s18 = int_to_ptr.vmem [resolvable:$false] %s924_s18 }
  0x2c   : > { %v304_v6 = vpack.c.bf16 %v299_v5, %v298_v3  ;;  %v730_v40 = vld [vmem:[%s1191_s4] ss:$0 sm:$0xff]  ;;  %s920_s28 = scalar_lea.vmem %s1140_s8, 512  ;;  %s926_s19 = scalar_lea.vmem %s925_s18, 1024 }
  0x2d   : > { %779 = vmatprep.mubr.msk.bf16.mxu0 %vm317_vm0, %v303_v4  ;;  %v739_v53 = vld [vmem:[%s1193_s6] ss:$0 sm:$0xff]  ;;  %p921_p6 = scmp.ne.s32.totalorder %s1140_s8, %s920_s28  ;;  %p927_p11 = scmp.lt.s32.totalorder %s1140_s8, %s925_s18 }
  0x2e   : > { %780 = vmatmul.mubr.msk.bf16.vlgmr.msra.gmra.mxu0 %vm317_vm0, %v304_v6  ;;  %788 = vmatpush3.bf16.msra.mxu1 %v880_v9  ;;  %p928_p12 = scmp.lt.s32.totalorder %s926_s19, %s920_s28 }
  0x2f   : > { %789 = vmatprep.subr.bf16.mxu1 %v881_v10  ;;  %804 = vmatpush3.bf16.msra.mxu0 %v886_v15  ;;  %p922_p9 = pnand %p921_p6, %p1070_p5 }
  0x30   : > { %805 = vmatprep.subr.bf16.mxu0 %v887_v16  ;;  %p929_p13 = por %p928_p12, %p927_p11 }
  0x31   : > { %p923_p10 = pneg %p922_p9 }
  0x32   : > { %790 = vmatpush3.bf16.msra.mxu1 %v881_v10 }
  0x33   : > { %791 = vmatprep.subr.bf16.mxu1 %v882_v11  ;;  %806 = vmatpush3.bf16.msra.mxu0 %v887_v16  ;;  %p930_p0 = pnand %p929_p13, %p923_p10 }
  0x34   : > { %807 = vmatprep.subr.bf16.mxu0 %v888_v17 }
  0x36   : > { %792 = vmatpush3.bf16.msra.mxu1 %v882_v11 }
  0x37   : > { %793 = vmatprep.subr.bf16.mxu1 %v883_v12  ;;  %808 = vmatpush3.bf16.msra.mxu0 %v888_v17 }
  0x38   : > { %809 = vmatprep.subr.bf16.mxu0 %v889_v18 }
  0x3a   : > { %794 = vmatpush3.bf16.msra.mxu1 %v883_v12 }
  0x3b   : > { %795 = vmatprep.subr.bf16.mxu1 %v884_v13  ;;  %810 = vmatpush3.bf16.msra.mxu0 %v889_v18 }
  0x3c   : > { %811 = vmatprep.subr.bf16.mxu0 %v890_v19 }
  0x3e   : > { %796 = vmatpush3.bf16.msra.mxu1 %v884_v13 }
  0x3f   : > { %797 = vmatprep.subr.bf16.mxu1 %v885_v14  ;;  %812 = vmatpush3.bf16.msra.mxu0 %v890_v19 }
  0x40   : > { %813 = vmatprep.subr.bf16.mxu0 %v891_v35 }
  0x42   : > { %798 = vmatpush3.bf16.msra.mxu1 %v885_v14 }
  0x43   : > { %814 = vmatpush3.bf16.msra.mxu0 %v891_v35 }
  0x44   : > { %815 = vmatprep.subr.bf16.mxu0 %v892_v36 }
  0x47   : > { %816 = vmatpush3.bf16.msra.mxu0 %v892_v36 }
  0x48   : > { %817 = vmatprep.subr.bf16.mxu0 %v893_v37 }
  0x4b   : > { %818 = vmatpush3.bf16.msra.mxu0 %v893_v37 }
  0xee   : > { %v781_v20 = vpop.f32.mrf.mxu0 }
  0xef   : > { %v367_v26 = vadd.f32 %v781_v20, %v726_v22 }
  0xf0   : > { %v358_v21 = vpop.f32.mrf.mxu0 }
  0xf1   : > { %v359_v24 = vadd.f32 %v726_v22, %v358_v21  ;;  %v375_v32 = vmax.f32 %v367_v26, 0.0 }
  0xf2   : > { %v782_v23 = vpop.f32.mrf.mxu0 }
  0xf3   : > { %v370_v25 = vadd.f32 %v782_v23, %v726_v22  ;;  %v373_v30 = vmax.f32 %v359_v24, 0.0 }
  0xf4   : > { %v361_v27 = vpop.f32.mrf.mxu0 }
  0xf5   : > { %v362_v28 = vadd.f32 %v726_v22, %v361_v27  ;;  %v376_v29 = vmax.f32 %v370_v25, 0.0 }
  0xf7   : > { %v374_v31 = vmax.f32 %v362_v28, 0.0  ;;  %v395_v34 = vpack.c.bf16 %v376_v29, %v375_v32 }
  0xf9   : > { %v394_v33 = vpack.c.bf16 %v374_v31, %v373_v30 }
  0xfb   : > { %799 = vmatprep.mubr.bf16.mxu1 %v394_v33 }
  0xfc   : > { %800 = vmatmul.mubr.bf16.vlgmr.msra.gmra.mxu1 %v395_v34 }
 0x1bc   : > { %v801_v38 = vpop.f32.mrf.mxu1 }
 0x1bd   : > { %v493_v44 = vadd.f32 %v801_v38, %v730_v40 }
 0x1be   : > { %v484_v39 = vpop.f32.mrf.mxu1 }
 0x1bf   : > { %v485_v42 = vadd.f32 %v730_v40, %v484_v39  ;;  %v501_v50 = vmax.f32 %v493_v44, 0.0 }
 0x1c0   : > { %v802_v41 = vpop.f32.mrf.mxu1 }
 0x1c1   : > { %v496_v43 = vadd.f32 %v802_v41, %v730_v40  ;;  %v499_v48 = vmax.f32 %v485_v42, 0.0 }
 0x1c2   : > { %v487_v45 = vpop.f32.mrf.mxu1 }
 0x1c3   : > { %v488_v46 = vadd.f32 %v730_v40, %v487_v45  ;;  %v502_v47 = vmax.f32 %v496_v43, 0.0 }
 0x1c5   : > { %v500_v49 = vmax.f32 %v488_v46, 0.0  ;;  %v521_v52 = vpack.c.bf16 %v502_v47, %v501_v50 }
 0x1c7   : > { %v520_v51 = vpack.c.bf16 %v500_v49, %v499_v48 }
 0x1c9   : > { %819 = vmatprep.mubr.bf16.mxu0 %v520_v51 }
 0x1ca   : > { %820 = vmatmul.mubr.bf16.vlgmr.msra.gmra.mxu0 %v521_v52 }
 0x28a   : > { %v821_v54 = vpop.f32.mrf.mxu0 }
 0x28b   : > { %v619_v55 = vadd.f32 %v821_v54, %v739_v53 }
 0x28c   : > { %v610_v56 = vpop.f32.mrf.mxu0 }
 0x28d   : > { %627 = vst [vmem:[%s287_s29 + $0x10] sm:$0xff] %v619_v55  ;;  %v611_v57 = vadd.f32 %v739_v53, %v610_v56 }
 0x28e   : > { %v822_v58 = vpop.f32.mrf.mxu0 }
 0x28f   : > { %625 = vst [vmem:[%s287_s29] sm:$0xff] %v611_v57  ;;  %v622_v59 = vadd.f32 %v822_v58, %v739_v53 }
 0x290   : > { %v613_v60 = vpop.f32.mrf.mxu0 }
 0x291   : > { %628 = vst [vmem:[%s287_s29 + $0x18] sm:$0xff] %v622_v59  ;;  %v614_v61 = vadd.f32 %v739_v53, %v613_v60 }
 0x293   : > { %626 = vst [vmem:[%s287_s29 + $0x8] sm:$0xff] %v614_v61 }
 0x294   : > { %933 = shalt.err (!%p930_p0)
}
 0x295   : > { %s934_s20 = scalar_lea.hbm %s1145_s15, 512  ;;  %s938_s23 = scalar_lea.hbm %s1194_s7, 1024 }
 0x296   : > { %p935_p1 = scmp.ne.s32.totalorder %s1145_s15, %s934_s20  ;;  %p939_p4 = scmp.lt.s32.totalorder %s1145_s15, %s1194_s7 }
 0x297   : > { %p940_p7 = scmp.lt.s32.totalorder %s938_s23, %s934_s20 }
 0x298   : > { %p936_p2 = pnand %p935_p1, %p1070_p5 }
 0x299   : > { %p941_p8 = por %p940_p7, %p939_p4 }
 0x29a   : > { %p937_p3 = pneg %p936_p2 }
 0x29c   : > { %p942_p6 = pnand %p941_p8, %p937_p3 }
 0x29e   : > { %945 = shalt.err (!%p942_p6)
}
 0x29f   : > { %s990_s14 = smov 128   ;;  %s991_s13 = smov 8  }
 0x2a0   : > { %827 = dma.vmem_to_hbm [thread:$0]  (%p1070_p5), %s1140_s8, 512, %s1145_s15, %s1147_s16, %s990_s14, %s990_s14, %s991_s13  }
 0x2a1 PF: > { %p839_p9 = scmp.ge.s32.totalorder %s984_s27, 2  ;;  %s658_s28 = sand.u32 1, %s972_s24  }
 0x2a2   : > { %p1198_p10 = scmp.ne.s32.totalorder %s1196_s12, 0  ;;  %s659_s17 = scalar_lea.sflag [#allocation4], %s658_s28 }
 0x2a4   : > { %p834_p11 = pnand %p839_p9, %p1198_p10 }
 0x2a6   : > { %p835_p12 = pneg %p834_p11 }
 0x2a8   : > { %967 = dma.done.wait (%p835_p12), %s659_s17, 512  }
 0x2a9   : > { %969 = vsyncadd (%p835_p12), %s659_s17, 4294966784  ;;  %p18_p13 = scmp.ge.s32.totalorder %s1057_s30, 4   ;;  %s1199_s24 = smov %s976_s25 }
 0x2aa   : > { %s1200_s25 = smov %s980_s26  ;;  %s1201_s26 = smov %s1068_s10 }
 0x2ab   : > { %s1202_s27 = smov %s1057_s30  ;;  %20 = sbr.rel (!%p18_p13) target bundleno = 4 (0x4), region = 88 }
 0x2b0   :  { %664 = vsyncpa [#allocation3], 1 }
 0x2b1   :  { %666 = vsyncpa [#allocation3 + $0x1], 1 }
 0x2b2   :  { %667 = vsyncpa [#allocation4], 1 }
 0x2b3   :  { %669 = vsyncpa [#allocation4 + $0x1], 1 }

</bundles_post_ra>
